<compile_context>
chip_gen: v6e
topology: v6e:2x2x1
jax: 0.10.0
libtpu: 0.0.40
codegen_flags: <defaults>
</compile_context>

<pallas_src>
import functools

import jax
import jax.numpy as jnp
from jax.experimental import pallas as pl
from jax.experimental.pallas import tpu as pltpu


def attention_kernel(x_full_ref, x_tile_ref, wq_ref, wk_ref, wv_ref,
                     wproj_ref, bias_ref, o_ref,
                     k_ref, v_ref, acc_ref, *, num_heads):
    # x_full_ref : (1, N, C)   full sequence of this batch element (resident per b)
    # x_tile_ref : (1, tq, C)  query rows for this grid step
    # wq_ref     : (H, C, D)   per-head q weight (softmax scale pre-folded)
    # wk_ref     : (H, C, D)   per-head k weight
    # wv_ref     : (H, C, D)   per-head v weight
    # wproj_ref  : (H, D, C)   per-head slice of the output projection
    # bias_ref   : (1, C)      output-projection bias
    # o_ref      : (1, tq, C)  output tile
    # k_ref,v_ref: (H, N, D)   K/V scratch (input dtype), staged once per batch elem
    # acc_ref    : (tq, C)     f32 output accumulator
    qi = pl.program_id(1)

    # ---- stage K / V head-major once per batch element (qi == 0) ----
    @pl.when(qi == 0)
    def _stage_kv():
        x_full = x_full_ref[0]                                    # (N, C)
        for h in range(num_heads):                                # once per b
            k_ref[h] = jnp.dot(x_full, wk_ref[h],
                               preferred_element_type=jnp.float32
                               ).astype(k_ref.dtype)
            v_ref[h] = jnp.dot(x_full, wv_ref[h],
                               preferred_element_type=jnp.float32
                               ).astype(v_ref.dtype)

    x_tile = x_tile_ref[0]                                        # (tq, C)
    acc_ref[...] = jnp.zeros_like(acc_ref)

    def head_body(h, carry):
        # q projection for this tile/head (scale already folded into wq).
        qh = jnp.dot(x_tile, wq_ref[h],
                     preferred_element_type=jnp.float32)          # (tq, D) f32 acc
        qh = qh.astype(k_ref.dtype)                               # operand dtype
        # scores: contract over D ("NT" matmul), f32 accumulation.
        s = jax.lax.dot_general(qh, k_ref[h], (((1,), (1,)), ((), ())),
                                preferred_element_type=jnp.float32)   # (tq, N)
        # numerically stable softmax; the divide is deferred to the EUP below.
        s = s - jnp.max(s, axis=-1, keepdims=True)
        p = jnp.exp(s)
        l = jnp.sum(p, axis=-1, keepdims=True)                    # (tq, 1)
        # TODO(synk): attn_drop (nn.Dropout) omitted — eval/inference forward.
        ctx = jnp.dot(p.astype(v_ref.dtype), v_ref[h],
                      preferred_element_type=jnp.float32)          # (tq, D)
        ctx = ctx * pl.reciprocal(l, approx=True)                 # EUP, O(tq*D)
        # per-head slice of the output projection, accumulated in f32.
        acc_ref[...] += jnp.dot(ctx.astype(wproj_ref.dtype), wproj_ref[h],
                                preferred_element_type=jnp.float32)   # (tq, C)
        return carry

    jax.lax.fori_loop(0, num_heads, head_body, 0)

    out = acc_ref[...] + bias_ref[...].astype(jnp.float32)
    # TODO(synk): proj_drop (nn.Dropout) omitted — eval/inference forward.
    o_ref[0] = out.astype(o_ref.dtype)


def _pick_q_tile(n):
    if n <= 128:
        return n
    for t in (128, 64, 32, 16, 8):
        if n % t == 0:
            return t
    return n


def _padded_bytes(shape, dtype):
    """(8/16,128)-tile-padded VMEM footprint of a block, dtype-aware."""
    itemsize = jnp.dtype(dtype).itemsize
    shape = tuple(int(d) for d in shape)
    if len(shape) < 2:
        shape = (1,) * (2 - len(shape)) + shape
    lead = 1
    for d in shape[:-2]:
        lead *= d
    sub_tile = max(8, 32 // itemsize)                 # 8 for f32, 16 for bf16
    sub = -(-shape[-2] // sub_tile) * sub_tile
    lane = -(-shape[-1] // 128) * 128
    return lead * sub * lane * itemsize


def attention_forward(x, wqkv, wproj, bproj, *, num_heads):
    """x: (B, N, C); wqkv: (3C, C); wproj: (C, C); bproj: (C,) (PyTorch layouts)."""
    B, N, C = x.shape
    assert C % num_heads == 0
    D = C // num_heads
    scale = float(D) ** -0.5
    dt = x.dtype

    # Head-major weights: every head lands in its own lane-aligned slab, so the
    # kernel never cuts an (8,128) tile when selecting a head.  The kernel only
    # ever computes x @ W (lane-dense RHS); the softmax scale is folded into wq.
    wqkv = jnp.asarray(wqkv)                                       # (3C, C)
    wq = (wqkv[0 * C:1 * C].reshape(num_heads, D, C).transpose(0, 2, 1)
          * scale).astype(dt)                                      # (H, C, D)
    wk = wqkv[1 * C:2 * C].reshape(num_heads, D, C).transpose(0, 2, 1).astype(dt)
    wv = wqkv[2 * C:3 * C].reshape(num_heads, D, C).transpose(0, 2, 1).astype(dt)
    wp = jnp.asarray(wproj).T.reshape(num_heads, D, C).astype(dt)  # (H, D, C)
    b2d = jnp.asarray(bproj).reshape(1, C).astype(dt)

    tq = _pick_q_tile(N)
    num_q_tiles = N // tq

    kernel = functools.partial(attention_kernel, num_heads=num_heads)

    # Dtype-aware VMEM budget: pipeline inputs/outputs double-buffered, scratch
    # single-buffered; 25% headroom; clamped under the v7x 64 MiB/TC limit.
    need = (2 * _padded_bytes((1, N, C), dt)                # full x (resident per b)
            + 2 * _padded_bytes((1, tq, C), dt)             # x q-tile
            + 2 * _padded_bytes((1, tq, C), dt)             # output tile
            + 2 * 3 * _padded_bytes((num_heads, C, D), dt)  # wq / wk / wv
            + 2 * _padded_bytes((num_heads, D, C), dt)      # wproj
            + 2 * _padded_bytes((1, C), dt)                 # bias
            + 2 * _padded_bytes((num_heads, N, D), dt)      # K, V scratch
            + _padded_bytes((tq, C), jnp.float32))          # f32 accumulator
    vmem_limit = int(min(max(need * 5 // 4, 4 << 20), 56 << 20))

    return pl.pallas_call(
        kernel,
        out_shape=jax.ShapeDtypeStruct((B, N, C), dt),
        grid_spec=pltpu.PrefetchScalarGridSpec(
            num_scalar_prefetch=0,
            grid=(B, num_q_tiles),
            in_specs=[
                pl.BlockSpec((1, N, C), lambda b, q: (b, 0, 0)),       # full x (K/V staging)
                pl.BlockSpec((1, tq, C), lambda b, q: (b, q, 0)),      # q rows for this step
                pl.BlockSpec((num_heads, C, D), lambda b, q: (0, 0, 0)),   # resident
                pl.BlockSpec((num_heads, C, D), lambda b, q: (0, 0, 0)),   # resident
                pl.BlockSpec((num_heads, C, D), lambda b, q: (0, 0, 0)),   # resident
                pl.BlockSpec((num_heads, D, C), lambda b, q: (0, 0, 0)),   # resident
                pl.BlockSpec((1, C), lambda b, q: (0, 0)),                 # resident
            ],
            out_specs=pl.BlockSpec((1, tq, C), lambda b, q: (b, q, 0)),
            scratch_shapes=[
                pltpu.VMEM((num_heads, N, D), dt),       # K (head-major, input dtype)
                pltpu.VMEM((num_heads, N, D), dt),       # V (head-major, input dtype)
                pltpu.VMEM((tq, C), jnp.float32),        # output accumulator
            ],
        ),
        compiler_params=pltpu.CompilerParams(
            dimension_semantics=("parallel", "arbitrary"),
            vmem_limit_bytes=vmem_limit,
        ),
    )(x, x, wq, wk, wv, wp, b2d)


def attention_ref(x, wqkv, wproj, bproj, *, num_heads):
    """Pure-JAX reference matching the PyTorch forward (eval mode)."""
    B, N, C = x.shape
    D = C // num_heads
    scale = float(D) ** -0.5
    hp = jax.lax.Precision.HIGHEST

    qkv = jnp.einsum("bnc,dc->bnd", x, wqkv, precision=hp)          # (B, N, 3C)
    qkv = qkv.reshape(B, N, 3, num_heads, D).transpose(2, 0, 3, 1, 4)
    q, k, v = qkv[0], qkv[1], qkv[2]                                # (B, H, N, D)
    attn = jnp.einsum("bhqd,bhkd->bhqk", q, k, precision=hp) * scale
    attn = jax.nn.softmax(attn, axis=-1)
    ctx = jnp.einsum("bhqk,bhkd->bhqd", attn, v, precision=hp)       # (B, H, N, D)
    ctx = ctx.transpose(0, 2, 1, 3).reshape(B, N, C)
    return jnp.einsum("bnc,dc->bnd", ctx, wproj, precision=hp) + bproj


if __name__ == "__main__":
    key = jax.random.PRNGKey(0)
    kx, kq, kp, kb = jax.random.split(key, 4)

    # Small shapes consistent with the module: batch=2, seq=8, dim=32, heads=8.
    B, N, C, H = 2, 8, 32, 8
    x = jax.random.normal(kx, (B, N, C), dtype=jnp.float32)

    # nn.Linear default init: uniform(-1/sqrt(fan_in), 1/sqrt(fan_in)).
    bound = 1.0 / (C ** 0.5)
    wqkv = jax.random.uniform(kq, (3 * C, C), minval=-bound, maxval=bound,
                              dtype=jnp.float32)
    wproj = jax.random.uniform(kp, (C, C), minval=-bound, maxval=bound,
                               dtype=jnp.float32)
    bproj = jax.random.uniform(kb, (C,), minval=-bound, maxval=bound,
                               dtype=jnp.float32)

    out = attention_forward(x, wqkv, wproj, bproj, num_heads=H)
    out = jax.block_until_ready(out)

    ref = attention_ref(x, wqkv, wproj, bproj, num_heads=H)
    assert out.shape == (B, N, C), out.shape
    # Slightly looser tolerance than before: pl.reciprocal(approx=True) in the
    # softmax normalization introduces ~1e-4 relative error vs. the exact ref.
    assert jnp.allclose(out, ref, atol=5e-3, rtol=5e-3), \
        float(jnp.max(jnp.abs(out - ref)))

    print("KERNEL_OK")
</pallas_src>

<mosaic_0001>
module attributes {stable_mosaic.version = 11 : i64} {
  func.func @attention_kernel(%arg0: i32, %arg1: i32, %arg2: memref<1x8x32xf32, #tpu.memory_space<vmem>>, %arg3: memref<1x8x32xf32, #tpu.memory_space<vmem>>, %arg4: memref<8x32x4xf32, #tpu.memory_space<vmem>>, %arg5: memref<8x32x4xf32, #tpu.memory_space<vmem>>, %arg6: memref<8x32x4xf32, #tpu.memory_space<vmem>>, %arg7: memref<8x4x32xf32, #tpu.memory_space<vmem>>, %arg8: memref<1x32xf32, #tpu.memory_space<vmem>>, %arg9: memref<1x8x32xf32, #tpu.memory_space<vmem>>, %arg10: memref<8x8x4xf32, #tpu.memory_space<vmem>>, %arg11: memref<8x8x4xf32, #tpu.memory_space<vmem>>, %arg12: memref<8x32xf32, #tpu.memory_space<vmem>>) attributes {dimension_semantics = [#tpu.dimension_semantics<parallel>, #tpu.dimension_semantics<arbitrary>], iteration_bounds = array<i64: 2, 1>, scalar_prefetch = 0 : i64, scratch_operands = 3 : i64, tpu.core_type = #tpu.core_type<tc>, window_params = [{transform_indices = @transform_0, window_bounds = array<i64: 1, 8, 32>}, {transform_indices = @transform_1, window_bounds = array<i64: 1, 8, 32>}, {pipeline_mode = #tpu.pipeline_mode<synchronous>, transform_indices = @transform_2, window_bounds = array<i64: 8, 32, 4>}, {pipeline_mode = #tpu.pipeline_mode<synchronous>, transform_indices = @transform_3, window_bounds = array<i64: 8, 32, 4>}, {pipeline_mode = #tpu.pipeline_mode<synchronous>, transform_indices = @transform_4, window_bounds = array<i64: 8, 32, 4>}, {pipeline_mode = #tpu.pipeline_mode<synchronous>, transform_indices = @transform_5, window_bounds = array<i64: 8, 4, 32>}, {pipeline_mode = #tpu.pipeline_mode<synchronous>, transform_indices = @transform_6, window_bounds = array<i64: 1, 32>}, {transform_indices = @transform_7, window_bounds = array<i64: 1, 8, 32>}]} {
    %c0_i32 = arith.constant 0 : i32
    %0 = arith.cmpi eq, %arg1, %c0_i32 : i32
    %1 = arith.extui %0 : i1 to i32
    %c0_i32_0 = arith.constant 0 : i32
    %2 = arith.cmpi ne, %1, %c0_i32_0 : i32
    scf.if %2 {
      %c0_14 = arith.constant 0 : index
      %c0_15 = arith.constant 0 : index
      %c0_16 = arith.constant 0 : index
      %15 = vector.load %arg2[%c0_14, %c0_15, %c0_16] : memref<1x8x32xf32, #tpu.memory_space<vmem>>, vector<1x8x32xf32>
      %16 = vector.shape_cast %15 : vector<1x8x32xf32> to vector<8x32xf32>
      %c0_17 = arith.constant 0 : index
      %c0_18 = arith.constant 0 : index
      %c0_19 = arith.constant 0 : index
      %17 = vector.load %arg5[%c0_17, %c0_18, %c0_19] : memref<8x32x4xf32, #tpu.memory_space<vmem>>, vector<1x32x4xf32>
      %18 = vector.shape_cast %17 : vector<1x32x4xf32> to vector<32x4xf32>
      %cst_20 = arith.constant dense<0.000000e+00> : vector<8x4xf32>
      %19 = tpu.matmul %16, %18, %cst_20 {dimension_numbers = #tpu.dot_dimension_numbers<[1], [0], [0], [1], [0, 0, 1, 1], [], []>} : vector<8x32xf32>, vector<32x4xf32>, vector<8x4xf32> -> vector<8x4xf32>
      %c0_21 = arith.constant 0 : index
      %c0_22 = arith.constant 0 : index
      %c0_23 = arith.constant 0 : index
      %20 = vector.load %arg10[%c0_21, %c0_22, %c0_23] : memref<8x8x4xf32, #tpu.memory_space<vmem>>, vector<1x8x4xf32>
      %21 = vector.shape_cast %20 : vector<1x8x4xf32> to vector<8x4xf32>
      %22 = vector.shape_cast %19 : vector<8x4xf32> to vector<1x8x4xf32>
      tpu.vector_store %arg10[%c0_21, %c0_22, %c0_23], %22 {strides = array<i32>} : memref<8x8x4xf32, #tpu.memory_space<vmem>>, vector<1x8x4xf32>,
      %c0_24 = arith.constant 0 : index
      %c0_25 = arith.constant 0 : index
      %c0_26 = arith.constant 0 : index
      %23 = vector.load %arg6[%c0_24, %c0_25, %c0_26] : memref<8x32x4xf32, #tpu.memory_space<vmem>>, vector<1x32x4xf32>
      %24 = vector.shape_cast %23 : vector<1x32x4xf32> to vector<32x4xf32>
      %cst_27 = arith.constant dense<0.000000e+00> : vector<8x4xf32>
      %25 = tpu.matmul %16, %24, %cst_27 {dimension_numbers = #tpu.dot_dimension_numbers<[1], [0], [0], [1], [0, 0, 1, 1], [], []>} : vector<8x32xf32>, vector<32x4xf32>, vector<8x4xf32> -> vector<8x4xf32>
      %c0_28 = arith.constant 0 : index
      %c0_29 = arith.constant 0 : index
      %c0_30 = arith.constant 0 : index
      %26 = vector.load %arg11[%c0_28, %c0_29, %c0_30] : memref<8x8x4xf32, #tpu.memory_space<vmem>>, vector<1x8x4xf32>
      %27 = vector.shape_cast %26 : vector<1x8x4xf32> to vector<8x4xf32>
      %28 = vector.shape_cast %25 : vector<8x4xf32> to vector<1x8x4xf32>
      tpu.vector_store %arg11[%c0_28, %c0_29, %c0_30], %28 {strides = array<i32>} : memref<8x8x4xf32, #tpu.memory_space<vmem>>, vector<1x8x4xf32>,
      %c1 = arith.constant 1 : index
      %c0_31 = arith.constant 0 : index
      %c0_32 = arith.constant 0 : index
      %29 = vector.load %arg5[%c1, %c0_31, %c0_32] : memref<8x32x4xf32, #tpu.memory_space<vmem>>, vector<1x32x4xf32>
      %30 = vector.shape_cast %29 : vector<1x32x4xf32> to vector<32x4xf32>
      %cst_33 = arith.constant dense<0.000000e+00> : vector<8x4xf32>
      %31 = tpu.matmul %16, %30, %cst_33 {dimension_numbers = #tpu.dot_dimension_numbers<[1], [0], [0], [1], [0, 0, 1, 1], [], []>} : vector<8x32xf32>, vector<32x4xf32>, vector<8x4xf32> -> vector<8x4xf32>
      %c1_34 = arith.constant 1 : index
      %c0_35 = arith.constant 0 : index
      %c0_36 = arith.constant 0 : index
      %32 = vector.load %arg10[%c1_34, %c0_35, %c0_36] : memref<8x8x4xf32, #tpu.memory_space<vmem>>, vector<1x8x4xf32>
      %33 = vector.shape_cast %32 : vector<1x8x4xf32> to vector<8x4xf32>
      %34 = vector.shape_cast %31 : vector<8x4xf32> to vector<1x8x4xf32>
      tpu.vector_store %arg10[%c1_34, %c0_35, %c0_36], %34 {strides = array<i32>} : memref<8x8x4xf32, #tpu.memory_space<vmem>>, vector<1x8x4xf32>,
      %c1_37 = arith.constant 1 : index
      %c0_38 = arith.constant 0 : index
      %c0_39 = arith.constant 0 : index
      %35 = vector.load %arg6[%c1_37, %c0_38, %c0_39] : memref<8x32x4xf32, #tpu.memory_space<vmem>>, vector<1x32x4xf32>
      %36 = vector.shape_cast %35 : vector<1x32x4xf32> to vector<32x4xf32>
      %cst_40 = arith.constant dense<0.000000e+00> : vector<8x4xf32>
      %37 = tpu.matmul %16, %36, %cst_40 {dimension_numbers = #tpu.dot_dimension_numbers<[1], [0], [0], [1], [0, 0, 1, 1], [], []>} : vector<8x32xf32>, vector<32x4xf32>, vector<8x4xf32> -> vector<8x4xf32>
      %c1_41 = arith.constant 1 : index
      %c0_42 = arith.constant 0 : index
      %c0_43 = arith.constant 0 : index
      %38 = vector.load %arg11[%c1_41, %c0_42, %c0_43] : memref<8x8x4xf32, #tpu.memory_space<vmem>>, vector<1x8x4xf32>
      %39 = vector.shape_cast %38 : vector<1x8x4xf32> to vector<8x4xf32>
      %40 = vector.shape_cast %37 : vector<8x4xf32> to vector<1x8x4xf32>
      tpu.vector_store %arg11[%c1_41, %c0_42, %c0_43], %40 {strides = array<i32>} : memref<8x8x4xf32, #tpu.memory_space<vmem>>, vector<1x8x4xf32>,
      %c2 = arith.constant 2 : index
      %c0_44 = arith.constant 0 : index
      %c0_45 = arith.constant 0 : index
      %41 = vector.load %arg5[%c2, %c0_44, %c0_45] : memref<8x32x4xf32, #tpu.memory_space<vmem>>, vector<1x32x4xf32>
      %42 = vector.shape_cast %41 : vector<1x32x4xf32> to vector<32x4xf32>
      %cst_46 = arith.constant dense<0.000000e+00> : vector<8x4xf32>
      %43 = tpu.matmul %16, %42, %cst_46 {dimension_numbers = #tpu.dot_dimension_numbers<[1], [0], [0], [1], [0, 0, 1, 1], [], []>} : vector<8x32xf32>, vector<32x4xf32>, vector<8x4xf32> -> vector<8x4xf32>
      %c2_47 = arith.constant 2 : index
      %c0_48 = arith.constant 0 : index
      %c0_49 = arith.constant 0 : index
      %44 = vector.load %arg10[%c2_47, %c0_48, %c0_49] : memref<8x8x4xf32, #tpu.memory_space<vmem>>, vector<1x8x4xf32>
      %45 = vector.shape_cast %44 : vector<1x8x4xf32> to vector<8x4xf32>
      %46 = vector.shape_cast %43 : vector<8x4xf32> to vector<1x8x4xf32>
      tpu.vector_store %arg10[%c2_47, %c0_48, %c0_49], %46 {strides = array<i32>} : memref<8x8x4xf32, #tpu.memory_space<vmem>>, vector<1x8x4xf32>,
      %c2_50 = arith.constant 2 : index
      %c0_51 = arith.constant 0 : index
      %c0_52 = arith.constant 0 : index
      %47 = vector.load %arg6[%c2_50, %c0_51, %c0_52] : memref<8x32x4xf32, #tpu.memory_space<vmem>>, vector<1x32x4xf32>
      %48 = vector.shape_cast %47 : vector<1x32x4xf32> to vector<32x4xf32>
      %cst_53 = arith.constant dense<0.000000e+00> : vector<8x4xf32>
      %49 = tpu.matmul %16, %48, %cst_53 {dimension_numbers = #tpu.dot_dimension_numbers<[1], [0], [0], [1], [0, 0, 1, 1], [], []>} : vector<8x32xf32>, vector<32x4xf32>, vector<8x4xf32> -> vector<8x4xf32>
      %c2_54 = arith.constant 2 : index
      %c0_55 = arith.constant 0 : index
      %c0_56 = arith.constant 0 : index
      %50 = vector.load %arg11[%c2_54, %c0_55, %c0_56] : memref<8x8x4xf32, #tpu.memory_space<vmem>>, vector<1x8x4xf32>
      %51 = vector.shape_cast %50 : vector<1x8x4xf32> to vector<8x4xf32>
      %52 = vector.shape_cast %49 : vector<8x4xf32> to vector<1x8x4xf32>
      tpu.vector_store %arg11[%c2_54, %c0_55, %c0_56], %52 {strides = array<i32>} : memref<8x8x4xf32, #tpu.memory_space<vmem>>, vector<1x8x4xf32>,
      %c3 = arith.constant 3 : index
      %c0_57 = arith.constant 0 : index
      %c0_58 = arith.constant 0 : index
      %53 = vector.load %arg5[%c3, %c0_57, %c0_58] : memref<8x32x4xf32, #tpu.memory_space<vmem>>, vector<1x32x4xf32>
      %54 = vector.shape_cast %53 : vector<1x32x4xf32> to vector<32x4xf32>
      %cst_59 = arith.constant dense<0.000000e+00> : vector<8x4xf32>
      %55 = tpu.matmul %16, %54, %cst_59 {dimension_numbers = #tpu.dot_dimension_numbers<[1], [0], [0], [1], [0, 0, 1, 1], [], []>} : vector<8x32xf32>, vector<32x4xf32>, vector<8x4xf32> -> vector<8x4xf32>
      %c3_60 = arith.constant 3 : index
      %c0_61 = arith.constant 0 : index
      %c0_62 = arith.constant 0 : index
      %56 = vector.load %arg10[%c3_60, %c0_61, %c0_62] : memref<8x8x4xf32, #tpu.memory_space<vmem>>, vector<1x8x4xf32>
      %57 = vector.shape_cast %56 : vector<1x8x4xf32> to vector<8x4xf32>
      %58 = vector.shape_cast %55 : vector<8x4xf32> to vector<1x8x4xf32>
      tpu.vector_store %arg10[%c3_60, %c0_61, %c0_62], %58 {strides = array<i32>} : memref<8x8x4xf32, #tpu.memory_space<vmem>>, vector<1x8x4xf32>,
      %c3_63 = arith.constant 3 : index
      %c0_64 = arith.constant 0 : index
      %c0_65 = arith.constant 0 : index
      %59 = vector.load %arg6[%c3_63, %c0_64, %c0_65] : memref<8x32x4xf32, #tpu.memory_space<vmem>>, vector<1x32x4xf32>
      %60 = vector.shape_cast %59 : vector<1x32x4xf32> to vector<32x4xf32>
      %cst_66 = arith.constant dense<0.000000e+00> : vector<8x4xf32>
      %61 = tpu.matmul %16, %60, %cst_66 {dimension_numbers = #tpu.dot_dimension_numbers<[1], [0], [0], [1], [0, 0, 1, 1], [], []>} : vector<8x32xf32>, vector<32x4xf32>, vector<8x4xf32> -> vector<8x4xf32>
      %c3_67 = arith.constant 3 : index
      %c0_68 = arith.constant 0 : index
      %c0_69 = arith.constant 0 : index
      %62 = vector.load %arg11[%c3_67, %c0_68, %c0_69] : memref<8x8x4xf32, #tpu.memory_space<vmem>>, vector<1x8x4xf32>
      %63 = vector.shape_cast %62 : vector<1x8x4xf32> to vector<8x4xf32>
      %64 = vector.shape_cast %61 : vector<8x4xf32> to vector<1x8x4xf32>
      tpu.vector_store %arg11[%c3_67, %c0_68, %c0_69], %64 {strides = array<i32>} : memref<8x8x4xf32, #tpu.memory_space<vmem>>, vector<1x8x4xf32>,
      %c4 = arith.constant 4 : index
      %c0_70 = arith.constant 0 : index
      %c0_71 = arith.constant 0 : index
      %65 = vector.load %arg5[%c4, %c0_70, %c0_71] : memref<8x32x4xf32, #tpu.memory_space<vmem>>, vector<1x32x4xf32>
      %66 = vector.shape_cast %65 : vector<1x32x4xf32> to vector<32x4xf32>
      %cst_72 = arith.constant dense<0.000000e+00> : vector<8x4xf32>
      %67 = tpu.matmul %16, %66, %cst_72 {dimension_numbers = #tpu.dot_dimension_numbers<[1], [0], [0], [1], [0, 0, 1, 1], [], []>} : vector<8x32xf32>, vector<32x4xf32>, vector<8x4xf32> -> vector<8x4xf32>
      %c4_73 = arith.constant 4 : index
      %c0_74 = arith.constant 0 : index
      %c0_75 = arith.constant 0 : index
      %68 = vector.load %arg10[%c4_73, %c0_74, %c0_75] : memref<8x8x4xf32, #tpu.memory_space<vmem>>, vector<1x8x4xf32>
      %69 = vector.shape_cast %68 : vector<1x8x4xf32> to vector<8x4xf32>
      %70 = vector.shape_cast %67 : vector<8x4xf32> to vector<1x8x4xf32>
      tpu.vector_store %arg10[%c4_73, %c0_74, %c0_75], %70 {strides = array<i32>} : memref<8x8x4xf32, #tpu.memory_space<vmem>>, vector<1x8x4xf32>,
      %c4_76 = arith.constant 4 : index
      %c0_77 = arith.constant 0 : index
      %c0_78 = arith.constant 0 : index
      %71 = vector.load %arg6[%c4_76, %c0_77, %c0_78] : memref<8x32x4xf32, #tpu.memory_space<vmem>>, vector<1x32x4xf32>
      %72 = vector.shape_cast %71 : vector<1x32x4xf32> to vector<32x4xf32>
      %cst_79 = arith.constant dense<0.000000e+00> : vector<8x4xf32>
      %73 = tpu.matmul %16, %72, %cst_79 {dimension_numbers = #tpu.dot_dimension_numbers<[1], [0], [0], [1], [0, 0, 1, 1], [], []>} : vector<8x32xf32>, vector<32x4xf32>, vector<8x4xf32> -> vector<8x4xf32>
      %c4_80 = arith.constant 4 : index
      %c0_81 = arith.constant 0 : index
      %c0_82 = arith.constant 0 : index
      %74 = vector.load %arg11[%c4_80, %c0_81, %c0_82] : memref<8x8x4xf32, #tpu.memory_space<vmem>>, vector<1x8x4xf32>
      %75 = vector.shape_cast %74 : vector<1x8x4xf32> to vector<8x4xf32>
      %76 = vector.shape_cast %73 : vector<8x4xf32> to vector<1x8x4xf32>
      tpu.vector_store %arg11[%c4_80, %c0_81, %c0_82], %76 {strides = array<i32>} : memref<8x8x4xf32, #tpu.memory_space<vmem>>, vector<1x8x4xf32>,
      %c5 = arith.constant 5 : index
      %c0_83 = arith.constant 0 : index
      %c0_84 = arith.constant 0 : index
      %77 = vector.load %arg5[%c5, %c0_83, %c0_84] : memref<8x32x4xf32, #tpu.memory_space<vmem>>, vector<1x32x4xf32>
      %78 = vector.shape_cast %77 : vector<1x32x4xf32> to vector<32x4xf32>
      %cst_85 = arith.constant dense<0.000000e+00> : vector<8x4xf32>
      %79 = tpu.matmul %16, %78, %cst_85 {dimension_numbers = #tpu.dot_dimension_numbers<[1], [0], [0], [1], [0, 0, 1, 1], [], []>} : vector<8x32xf32>, vector<32x4xf32>, vector<8x4xf32> -> vector<8x4xf32>
      %c5_86 = arith.constant 5 : index
      %c0_87 = arith.constant 0 : index
      %c0_88 = arith.constant 0 : index
      %80 = vector.load %arg10[%c5_86, %c0_87, %c0_88] : memref<8x8x4xf32, #tpu.memory_space<vmem>>, vector<1x8x4xf32>
      %81 = vector.shape_cast %80 : vector<1x8x4xf32> to vector<8x4xf32>
      %82 = vector.shape_cast %79 : vector<8x4xf32> to vector<1x8x4xf32>
      tpu.vector_store %arg10[%c5_86, %c0_87, %c0_88], %82 {strides = array<i32>} : memref<8x8x4xf32, #tpu.memory_space<vmem>>, vector<1x8x4xf32>,
      %c5_89 = arith.constant 5 : index
      %c0_90 = arith.constant 0 : index
      %c0_91 = arith.constant 0 : index
      %83 = vector.load %arg6[%c5_89, %c0_90, %c0_91] : memref<8x32x4xf32, #tpu.memory_space<vmem>>, vector<1x32x4xf32>
      %84 = vector.shape_cast %83 : vector<1x32x4xf32> to vector<32x4xf32>
      %cst_92 = arith.constant dense<0.000000e+00> : vector<8x4xf32>
      %85 = tpu.matmul %16, %84, %cst_92 {dimension_numbers = #tpu.dot_dimension_numbers<[1], [0], [0], [1], [0, 0, 1, 1], [], []>} : vector<8x32xf32>, vector<32x4xf32>, vector<8x4xf32> -> vector<8x4xf32>
      %c5_93 = arith.constant 5 : index
      %c0_94 = arith.constant 0 : index
      %c0_95 = arith.constant 0 : index
      %86 = vector.load %arg11[%c5_93, %c0_94, %c0_95] : memref<8x8x4xf32, #tpu.memory_space<vmem>>, vector<1x8x4xf32>
      %87 = vector.shape_cast %86 : vector<1x8x4xf32> to vector<8x4xf32>
      %88 = vector.shape_cast %85 : vector<8x4xf32> to vector<1x8x4xf32>
      tpu.vector_store %arg11[%c5_93, %c0_94, %c0_95], %88 {strides = array<i32>} : memref<8x8x4xf32, #tpu.memory_space<vmem>>, vector<1x8x4xf32>,
      %c6 = arith.constant 6 : index
      %c0_96 = arith.constant 0 : index
      %c0_97 = arith.constant 0 : index
      %89 = vector.load %arg5[%c6, %c0_96, %c0_97] : memref<8x32x4xf32, #tpu.memory_space<vmem>>, vector<1x32x4xf32>
      %90 = vector.shape_cast %89 : vector<1x32x4xf32> to vector<32x4xf32>
      %cst_98 = arith.constant dense<0.000000e+00> : vector<8x4xf32>
      %91 = tpu.matmul %16, %90, %cst_98 {dimension_numbers = #tpu.dot_dimension_numbers<[1], [0], [0], [1], [0, 0, 1, 1], [], []>} : vector<8x32xf32>, vector<32x4xf32>, vector<8x4xf32> -> vector<8x4xf32>
      %c6_99 = arith.constant 6 : index
      %c0_100 = arith.constant 0 : index
      %c0_101 = arith.constant 0 : index
      %92 = vector.load %arg10[%c6_99, %c0_100, %c0_101] : memref<8x8x4xf32, #tpu.memory_space<vmem>>, vector<1x8x4xf32>
      %93 = vector.shape_cast %92 : vector<1x8x4xf32> to vector<8x4xf32>
      %94 = vector.shape_cast %91 : vector<8x4xf32> to vector<1x8x4xf32>
      tpu.vector_store %arg10[%c6_99, %c0_100, %c0_101], %94 {strides = array<i32>} : memref<8x8x4xf32, #tpu.memory_space<vmem>>, vector<1x8x4xf32>,
      %c6_102 = arith.constant 6 : index
      %c0_103 = arith.constant 0 : index
      %c0_104 = arith.constant 0 : index
      %95 = vector.load %arg6[%c6_102, %c0_103, %c0_104] : memref<8x32x4xf32, #tpu.memory_space<vmem>>, vector<1x32x4xf32>
      %96 = vector.shape_cast %95 : vector<1x32x4xf32> to vector<32x4xf32>
      %cst_105 = arith.constant dense<0.000000e+00> : vector<8x4xf32>
      %97 = tpu.matmul %16, %96, %cst_105 {dimension_numbers = #tpu.dot_dimension_numbers<[1], [0], [0], [1], [0, 0, 1, 1], [], []>} : vector<8x32xf32>, vector<32x4xf32>, vector<8x4xf32> -> vector<8x4xf32>
      %c6_106 = arith.constant 6 : index
      %c0_107 = arith.constant 0 : index
      %c0_108 = arith.constant 0 : index
      %98 = vector.load %arg11[%c6_106, %c0_107, %c0_108] : memref<8x8x4xf32, #tpu.memory_space<vmem>>, vector<1x8x4xf32>
      %99 = vector.shape_cast %98 : vector<1x8x4xf32> to vector<8x4xf32>
      %100 = vector.shape_cast %97 : vector<8x4xf32> to vector<1x8x4xf32>
      tpu.vector_store %arg11[%c6_106, %c0_107, %c0_108], %100 {strides = array<i32>} : memref<8x8x4xf32, #tpu.memory_space<vmem>>, vector<1x8x4xf32>,
      %c7 = arith.constant 7 : index
      %c0_109 = arith.constant 0 : index
      %c0_110 = arith.constant 0 : index
      %101 = vector.load %arg5[%c7, %c0_109, %c0_110] : memref<8x32x4xf32, #tpu.memory_space<vmem>>, vector<1x32x4xf32>
      %102 = vector.shape_cast %101 : vector<1x32x4xf32> to vector<32x4xf32>
      %cst_111 = arith.constant dense<0.000000e+00> : vector<8x4xf32>
      %103 = tpu.matmul %16, %102, %cst_111 {dimension_numbers = #tpu.dot_dimension_numbers<[1], [0], [0], [1], [0, 0, 1, 1], [], []>} : vector<8x32xf32>, vector<32x4xf32>, vector<8x4xf32> -> vector<8x4xf32>
      %c7_112 = arith.constant 7 : index
      %c0_113 = arith.constant 0 : index
      %c0_114 = arith.constant 0 : index
      %104 = vector.load %arg10[%c7_112, %c0_113, %c0_114] : memref<8x8x4xf32, #tpu.memory_space<vmem>>, vector<1x8x4xf32>
      %105 = vector.shape_cast %104 : vector<1x8x4xf32> to vector<8x4xf32>
      %106 = vector.shape_cast %103 : vector<8x4xf32> to vector<1x8x4xf32>
      tpu.vector_store %arg10[%c7_112, %c0_113, %c0_114], %106 {strides = array<i32>} : memref<8x8x4xf32, #tpu.memory_space<vmem>>, vector<1x8x4xf32>,
      %c7_115 = arith.constant 7 : index
      %c0_116 = arith.constant 0 : index
      %c0_117 = arith.constant 0 : index
      %107 = vector.load %arg6[%c7_115, %c0_116, %c0_117] : memref<8x32x4xf32, #tpu.memory_space<vmem>>, vector<1x32x4xf32>
      %108 = vector.shape_cast %107 : vector<1x32x4xf32> to vector<32x4xf32>
      %cst_118 = arith.constant dense<0.000000e+00> : vector<8x4xf32>
      %109 = tpu.matmul %16, %108, %cst_118 {dimension_numbers = #tpu.dot_dimension_numbers<[1], [0], [0], [1], [0, 0, 1, 1], [], []>} : vector<8x32xf32>, vector<32x4xf32>, vector<8x4xf32> -> vector<8x4xf32>
      %c7_119 = arith.constant 7 : index
      %c0_120 = arith.constant 0 : index
      %c0_121 = arith.constant 0 : index
      %110 = vector.load %arg11[%c7_119, %c0_120, %c0_121] : memref<8x8x4xf32, #tpu.memory_space<vmem>>, vector<1x8x4xf32>
      %111 = vector.shape_cast %110 : vector<1x8x4xf32> to vector<8x4xf32>
      %112 = vector.shape_cast %109 : vector<8x4xf32> to vector<1x8x4xf32>
      tpu.vector_store %arg11[%c7_119, %c0_120, %c0_121], %112 {strides = array<i32>} : memref<8x8x4xf32, #tpu.memory_space<vmem>>, vector<1x8x4xf32>,
    } else {
    }
    %c0 = arith.constant 0 : index
    %c0_1 = arith.constant 0 : index
    %c0_2 = arith.constant 0 : index
    %3 = vector.load %arg3[%c0, %c0_1, %c0_2] : memref<1x8x32xf32, #tpu.memory_space<vmem>>, vector<1x8x32xf32>
    %4 = vector.shape_cast %3 : vector<1x8x32xf32> to vector<8x32xf32>
    %cst = arith.constant 0.000000e+00 : f32
    %5 = vector.broadcast %cst : f32 to vector<8x32xf32>
    %c0_3 = arith.constant 0 : index
    %c0_4 = arith.constant 0 : index
    %6 = vector.load %arg12[%c0_3, %c0_4] : memref<8x32xf32, #tpu.memory_space<vmem>>, vector<8x32xf32>
    tpu.vector_store %arg12[%c0_3, %c0_4], %5 {strides = array<i32>} : memref<8x32xf32, #tpu.memory_space<vmem>>, vector<8x32xf32>,
    %c0_i32_5 = arith.constant 0 : i32
    %c8_i32 = arith.constant 8 : i32
    %7 = arith.addi %c0_i32_5, %c8_i32 : i32
    %c1_i32 = arith.constant 1 : i32
    scf.for %arg13 = %c0_i32_5 to %7 step %c1_i32  : i32 {
      %15 = arith.index_cast %arg13 : i32 to index
      %c0_14 = arith.constant 0 : index
      %c0_15 = arith.constant 0 : index
      %16 = vector.load %arg4[%15, %c0_14, %c0_15] : memref<8x32x4xf32, #tpu.memory_space<vmem>>, vector<1x32x4xf32>
      %17 = vector.shape_cast %16 : vector<1x32x4xf32> to vector<32x4xf32>
      %cst_16 = arith.constant dense<0.000000e+00> : vector<8x4xf32>
      %18 = tpu.matmul %4, %17, %cst_16 {dimension_numbers = #tpu.dot_dimension_numbers<[1], [0], [0], [1], [0, 0, 1, 1], [], []>} : vector<8x32xf32>, vector<32x4xf32>, vector<8x4xf32> -> vector<8x4xf32>
      %19 = arith.index_cast %arg13 : i32 to index
      %c0_17 = arith.constant 0 : index
      %c0_18 = arith.constant 0 : index
      %20 = vector.load %arg10[%19, %c0_17, %c0_18] : memref<8x8x4xf32, #tpu.memory_space<vmem>>, vector<1x8x4xf32>
      %21 = vector.shape_cast %20 : vector<1x8x4xf32> to vector<8x4xf32>
      %cst_19 = arith.constant dense<0.000000e+00> : vector<8x8xf32>
      %22 = tpu.matmul %18, %21, %cst_19 {dimension_numbers = #tpu.dot_dimension_numbers<[1], [1], [0], [0], [0, 0, 1, 0], [], []>} : vector<8x4xf32>, vector<8x4xf32>, vector<8x8xf32> -> vector<8x8xf32>
      %cst_20 = arith.constant dense<0xFF800000> : vector<8xf32>
      %23 = vector.multi_reduction <maximumf>, %22, %cst_20 [1] : vector<8x8xf32> to vector<8xf32>
      %24 = vector.shape_cast %23 : vector<8xf32> to vector<8x1xf32>
      %25 = vector.broadcast %24 : vector<8x1xf32> to vector<8x8xf32>
      %26 = arith.subf %22, %25 : vector<8x8xf32>
      %27 = math.exp %26 : vector<8x8xf32>
      %cst_21 = arith.constant dense<0.000000e+00> : vector<8xf32>
      %28 = vector.multi_reduction <add>, %27, %cst_21 [1] : vector<8x8xf32> to vector<8xf32>
      %29 = vector.shape_cast %28 : vector<8xf32> to vector<8x1xf32>
      %30 = arith.index_cast %arg13 : i32 to index
      %c0_22 = arith.constant 0 : index
      %c0_23 = arith.constant 0 : index
      %31 = vector.load %arg11[%30, %c0_22, %c0_23] : memref<8x8x4xf32, #tpu.memory_space<vmem>>, vector<1x8x4xf32>
      %32 = vector.shape_cast %31 : vector<1x8x4xf32> to vector<8x4xf32>
      %cst_24 = arith.constant dense<0.000000e+00> : vector<8x4xf32>
      %33 = tpu.matmul %27, %32, %cst_24 {dimension_numbers = #tpu.dot_dimension_numbers<[1], [0], [0], [1], [0, 0, 1, 1], [], []>} : vector<8x8xf32>, vector<8x4xf32>, vector<8x4xf32> -> vector<8x4xf32>
      %34 = tpu.reciprocal %29 {approx = true} : vector<8x1xf32> -> vector<8x1xf32>
      %35 = vector.broadcast %34 : vector<8x1xf32> to vector<8x4xf32>
      %36 = arith.mulf %33, %35 : vector<8x4xf32>
      %c0_25 = arith.constant 0 : index
      %c0_26 = arith.constant 0 : index
      %37 = vector.load %arg12[%c0_25, %c0_26] : memref<8x32xf32, #tpu.memory_space<vmem>>, vector<8x32xf32>
      %38 = arith.index_cast %arg13 : i32 to index
      %c0_27 = arith.constant 0 : index
      %c0_28 = arith.constant 0 : index
      %39 = vector.load %arg7[%38, %c0_27, %c0_28] : memref<8x4x32xf32, #tpu.memory_space<vmem>>, vector<1x4x32xf32>
      %40 = vector.shape_cast %39 : vector<1x4x32xf32> to vector<4x32xf32>
      %cst_29 = arith.constant dense<0.000000e+00> : vector<8x32xf32>
      %41 = tpu.matmul %36, %40, %cst_29 {dimension_numbers = #tpu.dot_dimension_numbers<[1], [0], [0], [1], [0, 0, 1, 1], [], []>} : vector<8x4xf32>, vector<4x32xf32>, vector<8x32xf32> -> vector<8x32xf32>
      %42 = arith.addf %37, %41 : vector<8x32xf32>
      %c0_30 = arith.constant 0 : index
      %c0_31 = arith.constant 0 : index
      %43 = vector.load %arg12[%c0_30, %c0_31] : memref<8x32xf32, #tpu.memory_space<vmem>>, vector<8x32xf32>
      tpu.vector_store %arg12[%c0_30, %c0_31], %42 {strides = array<i32>} : memref<8x32xf32, #tpu.memory_space<vmem>>, vector<8x32xf32>,
    }
    %c8_i32_6 = arith.constant 8 : i32
    %c0_7 = arith.constant 0 : index
    %c0_8 = arith.constant 0 : index
    %8 = vector.load %arg12[%c0_7, %c0_8] : memref<8x32xf32, #tpu.memory_space<vmem>>, vector<8x32xf32>
    %c0_9 = arith.constant 0 : index
    %c0_10 = arith.constant 0 : index
    %9 = vector.load %arg8[%c0_9, %c0_10] : memref<1x32xf32, #tpu.memory_space<vmem>>, vector<1x32xf32>
    %10 = vector.broadcast %9 : vector<1x32xf32> to vector<8x32xf32>
    %11 = arith.addf %8, %10 : vector<8x32xf32>
    %c0_11 = arith.constant 0 : index
    %c0_12 = arith.constant 0 : index
    %c0_13 = arith.constant 0 : index
    %12 = vector.load %arg9[%c0_11, %c0_12, %c0_13] : memref<1x8x32xf32, #tpu.memory_space<vmem>>, vector<1x8x32xf32>
    %13 = vector.shape_cast %12 : vector<1x8x32xf32> to vector<8x32xf32>
    %14 = vector.shape_cast %11 : vector<8x32xf32> to vector<1x8x32xf32>
    tpu.vector_store %arg9[%c0_11, %c0_12, %c0_13], %14 {strides = array<i32>} : memref<1x8x32xf32, #tpu.memory_space<vmem>>, vector<1x8x32xf32>,
    return
  }
  func.func @transform_0(%arg0: i32, %arg1: i32) -> (i32, i32, i32) {
    %c0_i32 = arith.constant 0 : i32
    %c0_i32_0 = arith.constant 0 : i32
    %c0_i32_1 = arith.constant 0 : i32
    return %arg0, %c0_i32, %c0_i32_0 : i32, i32, i32
  }
  func.func @transform_1(%arg0: i32, %arg1: i32) -> (i32, i32, i32) {
    %c0_i32 = arith.constant 0 : i32
    %c0_i32_0 = arith.constant 0 : i32
    return %arg0, %arg1, %c0_i32 : i32, i32, i32
  }
  func.func @transform_2(%arg0: i32, %arg1: i32) -> (i32, i32, i32) {
    %c0_i32 = arith.constant 0 : i32
    %c0_i32_0 = arith.constant 0 : i32
    %c0_i32_1 = arith.constant 0 : i32
    %c0_i32_2 = arith.constant 0 : i32
    return %c0_i32, %c0_i32_0, %c0_i32_1 : i32, i32, i32
  }
  func.func @transform_3(%arg0: i32, %arg1: i32) -> (i32, i32, i32) {
    %c0_i32 = arith.constant 0 : i32
    %c0_i32_0 = arith.constant 0 : i32
    %c0_i32_1 = arith.constant 0 : i32
    %c0_i32_2 = arith.constant 0 : i32
    return %c0_i32, %c0_i32_0, %c0_i32_1 : i32, i32, i32
  }
  func.func @transform_4(%arg0: i32, %arg1: i32) -> (i32, i32, i32) {
    %c0_i32 = arith.constant 0 : i32
    %c0_i32_0 = arith.constant 0 : i32
    %c0_i32_1 = arith.constant 0 : i32
    %c0_i32_2 = arith.constant 0 : i32
    return %c0_i32, %c0_i32_0, %c0_i32_1 : i32, i32, i32
  }
  func.func @transform_5(%arg0: i32, %arg1: i32) -> (i32, i32, i32) {
    %c0_i32 = arith.constant 0 : i32
    %c0_i32_0 = arith.constant 0 : i32
    %c0_i32_1 = arith.constant 0 : i32
    %c0_i32_2 = arith.constant 0 : i32
    return %c0_i32, %c0_i32_0, %c0_i32_1 : i32, i32, i32
  }
  func.func @transform_6(%arg0: i32, %arg1: i32) -> (i32, i32) {
    %c0_i32 = arith.constant 0 : i32
    %c0_i32_0 = arith.constant 0 : i32
    %c0_i32_1 = arith.constant 0 : i32
    return %c0_i32, %c0_i32_0 : i32, i32
  }
  func.func @transform_7(%arg0: i32, %arg1: i32) -> (i32, i32, i32) {
    %c0_i32 = arith.constant 0 : i32
    %c0_i32_0 = arith.constant 0 : i32
    return %arg0, %arg1, %c0_i32 : i32, i32, i32
  }
}

</mosaic_0001>

<bundles_post_ra>
// kernel: tpu_custom_call.1
= control target key start
LH: loop header
LB: loop body
LE: loop exit
PB: predicated region body
PF: predicated region fallthrough
CT: control target
= control target key end

     0   :  { %12 = vsyncpa [#allocation6], 0  ;;  %s3094_s0 = inlined_call_operand.vmem [shape: f32[2,8,32], index: 0, kind: input, shape index: {}]   ;;  %s3095_s1 = inlined_call_operand.vmem [shape: f32[2,8,32], index: 1, kind: input, shape index: {}]   ;;  %s3096_s2 = inlined_call_operand.vmem [shape: f32[8,32,4], index: 2, kind: input, shape index: {}]   ;;  %s3097_s3 = inlined_call_operand.vmem [shape: f32[8,32,4], index: 3, kind: input, shape index: {}]   ;;  %s3098_s4 = inlined_call_operand.vmem [shape: f32[8,32,4], index: 4, kind: input, shape index: {}]   ;;  %s3099_s5 = inlined_call_operand.vmem [shape: f32[8,4,32], index: 5, kind: input, shape index: {}]   ;;  %s3100_s6 = inlined_call_operand.vmem [shape: f32[1,32], index: 6, kind: input, shape index: {}]   ;;  %s3101_s7 = inlined_call_operand.hbm [shape: f32[2,8,32], index: 7, kind: output, shape index: {}]  }
   0x1   :  { %14 = vsyncpa [#allocation6 + $0x1], 0  ;;  %s2602_s24 = smov 0   ;;  %s2604_s25 = smov 0  }
   0x2   :  { %s2606_s26 = smov 0   ;;  %s2608_s27 = smov 0  }
   0x3   :  { %s2610_s28 = smov 0   ;;  %s2612_s29 = smov 0  }
   0x4 LB: > { %s2013_s30 = sadd.s32 4294967295, %s2551_s29   ;;  %s2014_s8 = sadd.s32 4294967294, %s2551_s29   ;;  %s2551_s29 = sphi %s2612_s29, %s20_s29   ;;  %s2547_s28 = sphi %s2610_s28, %s3110_s28   ;;  %s2543_s27 = sphi %s2608_s27, %s3109_s27   ;;  %s2539_s26 = sphi %s2606_s26, %s3108_s26   ;;  %s2535_s25 = sphi %s2604_s25, %s3107_s25   ;;  %s2531_s24 = sphi %s2602_s24, %s3106_s24  }
   0x5   : > { %s32_s9 = sadd.s32 1, %s2547_s28  ;;  %s200_s10 = sadd.s32 1, %s2539_s26 }
   0x6   : > { %p34_p0 = scmp.ge.s32.totalorder %s32_s9, 2  ;;  %p210_p1 = scmp.ne.s32.totalorder %s2539_s26, %s2535_s25 }
   0x7   : > { %p211_p2 = scmp.eq.s32.totalorder %s2013_s30, 1  ;;  %p216_p3 = scmp.ne.s32.totalorder %s2535_s25, %s2531_s24 }
   0x8   : > { %s3112_s9 = smov (%p34_p0, %s32_s9), 0  ;;  %p217_p5 = scmp.eq.s32.totalorder %s2014_s8, 1 }
   0x9   : > { %p2642_p4 = por %p211_p2, %p210_p1  ;;  %s195_s12 = ssub.s32 %s2547_s28, %s3112_s9 }
   0xa   : > { %p2017_p6 = scmp.ge.s32.totalorder %s2551_s29, 1  ;;  %p198_p7 = scmp.eq.s32.totalorder %s195_s12, 0 }
   0xb   : > { %p2649_p8 = por %p217_p5, %p216_p3  ;;  %p267_p9 = scmp.lt.s32.totalorder %s2551_s29, 3 }
   0xc   : > { %s2655_s14 = scalar_select %p198_p7, %s2539_s26, %s200_s10  }
   0xd   : > { %p268_p10 = pnand %p2017_p6, %p267_p9 }
   0xe   : > { %s3102_s15 = sand.u32 (!%p268_p10), 1, %s2535_s25   ;;  %p305_p11 = scmp.lt.s32.totalorder (!%p268_p10), %s2543_s27, 1 }
   0xf   : > { %271 = sbr.rel (%p268_p10) target bundleno = 1261 (0x4ed), region = 48  ;;  %s2666_s20 = sshll.u32 (!%p268_p10), %s3102_s15, 3 }
  0x10   : > { %s3013_s22 = smov (!%p268_p10), 0  }
  0x14   : > { %v324_v0 = vld [vmem:[%s3097_s3 + $0x18] sm:$0xff]  ;;  %v2557_v2 = vmov 0.0   ;;  %v323_v3 = vld [vmem:[%s3097_s3 + $0x10] sm:$0xff]  ;;  %vm325_vm0 = vcmask 261120   ;;  %v322_v5 = vld [vmem:[%s3097_s3 + $0x8] sm:$0xff]  ;;  %s306_s17 = scalar_select %p305_p11, %s2543_s27, 1 }
  0x15   : > { %v404_v1 = vld [vmem:[%s3098_s4 + $0x18] sm:$0xff]  ;;  %2198 = vmatprep.subr.mxu0 %v2557_v2  ;;  %2209 = vmatprep.subr.mxu1 %v2557_v2  ;;  %v403_v4 = vld [vmem:[%s3098_s4 + $0x10] sm:$0xff]  ;;  %1556 = vst.msk [vmem:[#allocation4] sm:$0xff] %vm325_vm0, %v2557_v2  ;;  %v402_v6 = vld [vmem:[%s3098_s4 + $0x8] sm:$0xff]  ;;  %vm2558_vm1 = vmmov 0   ;;  %vm399_vm2 = vcmask 31744  }
  0x16   : > { %2199 = vmatpush3.msra.mxu0 %v324_v0  ;;  %2210 = vmatpush3.msra.mxu1 %v404_v1  ;;  %v321_v7 = vld [vmem:[%s3097_s3] sm:$0xff]  ;;  %s2019_s21 = sshll.u32 %s306_s17, 3  ;;  %v2026_v11 = vld [vmem:[%s3097_s3 + $0x38] sm:$0xff]  ;;  %v2025_v13 = vld [vmem:[%s3097_s3 + $0x30] sm:$0xff] }
  0x17   : > { %2200 = vmatprep.subr.mxu0 %v2557_v2  ;;  %2211 = vmatprep.subr.mxu1 %v2557_v2  ;;  %v401_v8 = vld [vmem:[%s3098_s4] sm:$0xff]  ;;  %s308_s10 = scalar_lea.vmem %s3094_s0, %s2019_s21  ;;  %s315_s15 = scalar_lea.vmem %s3095_s1, %s2019_s21  ;;  %v2031_v12 = vld [vmem:[%s3098_s4 + $0x38] sm:$0xff]  ;;  %v2030_v14 = vld [vmem:[%s3098_s4 + $0x30] sm:$0xff] }
  0x18   : > { %2201 = vmatpush3.msra.mxu0 %v323_v3  ;;  %2212 = vmatpush3.msra.mxu1 %v403_v4  ;;  %v2704_v9 = vld [vmem:[%s308_s10] sm:$0xff]  ;;  %v2024_v15 = vld [vmem:[%s3097_s3 + $0x28] sm:$0xff]  ;;  %v2036_v19 = vld [vmem:[%s3097_s3 + $0x58] sm:$0xff] }
  0x19   : > { %2202 = vmatprep.subr.mxu0 %v2557_v2  ;;  %2213 = vmatprep.subr.mxu1 %v2557_v2  ;;  %v2706_v10 = vld [vmem:[%s315_s15] sm:$0xff]  ;;  %v2029_v16 = vld [vmem:[%s3098_s4 + $0x28] sm:$0xff]  ;;  %v2041_v20 = vld [vmem:[%s3098_s4 + $0x58] sm:$0xff]  ;;  %s304_s15 = scalar_lea.vmem [#allocation5], %s2666_s20 }
  0x1a   : > { %2203 = vmatpush3.msra.mxu0 %v322_v5  ;;  %2214 = vmatpush3.msra.mxu1 %v402_v6  ;;  %v2023_v17 = vld [vmem:[%s3097_s3 + $0x20] sm:$0xff]  ;;  %v2035_v21 = vld [vmem:[%s3097_s3 + $0x50] sm:$0xff]  ;;  %v2034_v23 = vld [vmem:[%s3097_s3 + $0x48] sm:$0xff] }
  0x1b   : > { %2204 = vmatprep.subr.mxu0 %v2557_v2  ;;  %2215 = vmatprep.subr.mxu1 %v2557_v2  ;;  %v2028_v18 = vld [vmem:[%s3098_s4 + $0x20] sm:$0xff]  ;;  %v2040_v22 = vld [vmem:[%s3098_s4 + $0x50] sm:$0xff]  ;;  %v2039_v24 = vld [vmem:[%s3098_s4 + $0x48] sm:$0xff] }
  0x1c   : > { %2205 = vmatpush3.msra.mxu0 %v321_v7  ;;  %2206 = vmatprep.mubr.msk.f32.mxu0 %vm2558_vm1, %v2557_v2  ;;  %v2033_v25 = vld [vmem:[%s3097_s3 + $0x40] sm:$0xff]  ;;  %v2046_v27 = vld [vmem:[%s3097_s3 + $0x78] sm:$0xff]  ;;  %v2045_v29 = vld [vmem:[%s3097_s3 + $0x70] sm:$0xff] }
  0x1d   : > { %2216 = vmatpush3.msra.mxu1 %v401_v8  ;;  %2217 = vmatprep.mubr.msk.f32.mxu1 %vm2558_vm1, %v2557_v2  ;;  %v2038_v26 = vld [vmem:[%s3098_s4 + $0x40] sm:$0xff]  ;;  %v2051_v28 = vld [vmem:[%s3098_s4 + $0x78] sm:$0xff]  ;;  %v2050_v30 = vld [vmem:[%s3098_s4 + $0x70] sm:$0xff] }
  0x1e   : > { %2207 = vmatmul.mubr.msk.f32.vlgmr.msra.gmra.mxu0 %vm325_vm0, %v2704_v9  ;;  %2218 = vmatmul.mubr.msk.f32.vlgmr.msra.gmra.mxu1 %vm325_vm0, %v2704_v9  ;;  %v2044_v31 = vld [vmem:[%s3097_s3 + $0x68] sm:$0xff]  ;;  %v2043_v33 = vld [vmem:[%s3097_s3 + $0x60] sm:$0xff]  ;;  %v2056_v35 = vld [vmem:[%s3097_s3 + $0x98] sm:$0xff] }
  0x1f   : > { %2220 = vmatprep.subr.mxu0 %v2557_v2  ;;  %2231 = vmatprep.subr.mxu1 %v2557_v2  ;;  %v2049_v32 = vld [vmem:[%s3098_s4 + $0x68] sm:$0xff]  ;;  %v2048_v34 = vld [vmem:[%s3098_s4 + $0x60] sm:$0xff]  ;;  %v2061_v36 = vld [vmem:[%s3098_s4 + $0x98] sm:$0xff] }
  0x20   : > { %2221 = vmatpush3.msra.mxu0 %v2026_v11  ;;  %2232 = vmatpush3.msra.mxu1 %v2031_v12  ;;  %v2055_v37 = vld [vmem:[%s3097_s3 + $0x90] sm:$0xff]  ;;  %v2054_v39 = vld [vmem:[%s3097_s3 + $0x88] sm:$0xff]  ;;  %v2053_v41 = vld [vmem:[%s3097_s3 + $0x80] sm:$0xff] }
  0x21   : > { %2222 = vmatprep.subr.mxu0 %v2557_v2  ;;  %2233 = vmatprep.subr.mxu1 %v2557_v2  ;;  %v2060_v38 = vld [vmem:[%s3098_s4 + $0x90] sm:$0xff]  ;;  %v2059_v40 = vld [vmem:[%s3098_s4 + $0x88] sm:$0xff]  ;;  %v2058_v42 = vld [vmem:[%s3098_s4 + $0x80] sm:$0xff] }
  0x22   : > { %2223 = vmatpush3.msra.mxu0 %v2025_v13  ;;  %2234 = vmatpush3.msra.mxu1 %v2030_v14  ;;  %v2066_v43 = vld [vmem:[%s3097_s3 + $0xb8] sm:$0xff]  ;;  %v2065_v45 = vld [vmem:[%s3097_s3 + $0xb0] sm:$0xff]  ;;  %v2064_v47 = vld [vmem:[%s3097_s3 + $0xa8] sm:$0xff] }
  0x23   : > { %2224 = vmatprep.subr.mxu0 %v2557_v2  ;;  %2235 = vmatprep.subr.mxu1 %v2557_v2  ;;  %v2071_v44 = vld [vmem:[%s3098_s4 + $0xb8] sm:$0xff]  ;;  %v2070_v46 = vld [vmem:[%s3098_s4 + $0xb0] sm:$0xff]  ;;  %v2069_v48 = vld [vmem:[%s3098_s4 + $0xa8] sm:$0xff] }
  0x24   : > { %2225 = vmatpush3.msra.mxu0 %v2024_v15  ;;  %2236 = vmatpush3.msra.mxu1 %v2029_v16  ;;  %v2063_v49 = vld [vmem:[%s3097_s3 + $0xa0] sm:$0xff]  ;;  %v2076_v51 = vld [vmem:[%s3097_s3 + $0xd8] sm:$0xff]  ;;  %v2075_v53 = vld [vmem:[%s3097_s3 + $0xd0] sm:$0xff] }
  0x25   : > { %2226 = vmatprep.subr.mxu0 %v2557_v2  ;;  %2237 = vmatprep.subr.mxu1 %v2557_v2  ;;  %v2068_v50 = vld [vmem:[%s3098_s4 + $0xa0] sm:$0xff]  ;;  %v2081_v52 = vld [vmem:[%s3098_s4 + $0xd8] sm:$0xff]  ;;  %v2080_v54 = vld [vmem:[%s3098_s4 + $0xd0] sm:$0xff] }
  0x26   : > { %2227 = vmatpush3.msra.mxu0 %v2023_v17  ;;  %2228 = vmatprep.mubr.msk.f32.mxu0 %vm2558_vm1, %v2557_v2  ;;  %v2074_v55 = vld [vmem:[%s3097_s3 + $0xc8] sm:$0xff]  ;;  %v2073_v57 = vld [vmem:[%s3097_s3 + $0xc0] sm:$0xff]  ;;  %v2086_v59 = vld [vmem:[%s3097_s3 + $0xf8] sm:$0xff] }
  0x27   : > { %2238 = vmatpush3.msra.mxu1 %v2028_v18  ;;  %2239 = vmatprep.mubr.msk.f32.mxu1 %vm2558_vm1, %v2557_v2  ;;  %v2079_v56 = vld [vmem:[%s3098_s4 + $0xc8] sm:$0xff]  ;;  %v2078_v58 = vld [vmem:[%s3098_s4 + $0xc0] sm:$0xff]  ;;  %v2091_v60 = vld [vmem:[%s3098_s4 + $0xf8] sm:$0xff] }
  0x28   : > { %2229 = vmatmul.mubr.msk.f32.vlgmr.msra.gmra.mxu0 %vm325_vm0, %v2704_v9  ;;  %2240 = vmatmul.mubr.msk.f32.vlgmr.msra.gmra.mxu1 %vm325_vm0, %v2704_v9  ;;  %v2085_v61 = vld [vmem:[%s3097_s3 + $0xf0] sm:$0xff]  ;;  %v2084_v63 = vld [vmem:[%s3097_s3 + $0xe8] sm:$0xff]  ;;  %v2083_v1 = vld [vmem:[%s3097_s3 + $0xe0] sm:$0xff] }
  0x29   : > { %2242 = vmatprep.subr.mxu0 %v2557_v2  ;;  %2253 = vmatprep.subr.mxu1 %v2557_v2  ;;  %v2090_v62 = vld [vmem:[%s3098_s4 + $0xf0] sm:$0xff]  ;;  %v2089_v0 = vld [vmem:[%s3098_s4 + $0xe8] sm:$0xff]  ;;  %v2088_v3 = vld [vmem:[%s3098_s4 + $0xe0] sm:$0xff] }
  0x2a   : > { %2243 = vmatpush3.msra.mxu0 %v2036_v19  ;;  %2254 = vmatpush3.msra.mxu1 %v2041_v20 }
  0x2b   : > { %2244 = vmatprep.subr.mxu0 %v2557_v2  ;;  %2255 = vmatprep.subr.mxu1 %v2557_v2 }
  0x2c   : > { %2245 = vmatpush3.msra.mxu0 %v2035_v21  ;;  %2256 = vmatpush3.msra.mxu1 %v2040_v22 }
  0x2d   : > { %2246 = vmatprep.subr.mxu0 %v2557_v2  ;;  %2257 = vmatprep.subr.mxu1 %v2557_v2 }
  0x2e   : > { %2247 = vmatpush3.msra.mxu0 %v2034_v23  ;;  %2258 = vmatpush3.msra.mxu1 %v2039_v24 }
  0x2f   : > { %2248 = vmatprep.subr.mxu0 %v2557_v2  ;;  %2259 = vmatprep.subr.mxu1 %v2557_v2 }
  0x30   : > { %2249 = vmatpush3.msra.mxu0 %v2033_v25  ;;  %2250 = vmatprep.mubr.msk.f32.mxu0 %vm2558_vm1, %v2557_v2 }
  0x31   : > { %2260 = vmatpush3.msra.mxu1 %v2038_v26  ;;  %2261 = vmatprep.mubr.msk.f32.mxu1 %vm2558_vm1, %v2557_v2 }
  0x32   : > { %2251 = vmatmul.mubr.msk.f32.vlgmr.msra.gmra.mxu0 %vm325_vm0, %v2704_v9  ;;  %2262 = vmatmul.mubr.msk.f32.vlgmr.msra.gmra.mxu1 %vm325_vm0, %v2704_v9 }
  0x33   : > { %2264 = vmatprep.subr.mxu0 %v2557_v2  ;;  %2275 = vmatprep.subr.mxu1 %v2557_v2 }
  0x34   : > { %2265 = vmatpush3.msra.mxu0 %v2046_v27  ;;  %2276 = vmatpush3.msra.mxu1 %v2051_v28 }
  0x35   : > { %2266 = vmatprep.subr.mxu0 %v2557_v2  ;;  %2277 = vmatprep.subr.mxu1 %v2557_v2 }
  0x36   : > { %2267 = vmatpush3.msra.mxu0 %v2045_v29  ;;  %2278 = vmatpush3.msra.mxu1 %v2050_v30 }
  0x37   : > { %2268 = vmatprep.subr.mxu0 %v2557_v2  ;;  %2279 = vmatprep.subr.mxu1 %v2557_v2 }
  0x38   : > { %2269 = vmatpush3.msra.mxu0 %v2044_v31  ;;  %2280 = vmatpush3.msra.mxu1 %v2049_v32 }
  0x39   : > { %2270 = vmatprep.subr.mxu0 %v2557_v2  ;;  %2281 = vmatprep.subr.mxu1 %v2557_v2 }
  0x3a   : > { %2271 = vmatpush3.msra.mxu0 %v2043_v33  ;;  %2272 = vmatprep.mubr.msk.f32.mxu0 %vm2558_vm1, %v2557_v2 }
  0x3b   : > { %2282 = vmatpush3.msra.mxu1 %v2048_v34  ;;  %2283 = vmatprep.mubr.msk.f32.mxu1 %vm2558_vm1, %v2557_v2 }
  0x3c   : > { %2273 = vmatmul.mubr.msk.f32.vlgmr.msra.gmra.mxu0 %vm325_vm0, %v2704_v9  ;;  %2284 = vmatmul.mubr.msk.f32.vlgmr.msra.gmra.mxu1 %vm325_vm0, %v2704_v9 }
  0x3d   : > { %2286 = vmatprep.subr.mxu0 %v2557_v2  ;;  %2297 = vmatprep.subr.mxu1 %v2557_v2 }
  0x3e   : > { %2287 = vmatpush3.msra.mxu0 %v2056_v35  ;;  %2298 = vmatpush3.msra.mxu1 %v2061_v36 }
  0x3f   : > { %2288 = vmatprep.subr.mxu0 %v2557_v2  ;;  %2299 = vmatprep.subr.mxu1 %v2557_v2 }
  0x40   : > { %2289 = vmatpush3.msra.mxu0 %v2055_v37  ;;  %2300 = vmatpush3.msra.mxu1 %v2060_v38 }
  0x41   : > { %2290 = vmatprep.subr.mxu0 %v2557_v2  ;;  %2301 = vmatprep.subr.mxu1 %v2557_v2 }
  0x42   : > { %2291 = vmatpush3.msra.mxu0 %v2054_v39  ;;  %2302 = vmatpush3.msra.mxu1 %v2059_v40 }
  0x43   : > { %2292 = vmatprep.subr.mxu0 %v2557_v2  ;;  %2303 = vmatprep.subr.mxu1 %v2557_v2 }
  0x44   : > { %2293 = vmatpush3.msra.mxu0 %v2053_v41  ;;  %2294 = vmatprep.mubr.msk.f32.mxu0 %vm2558_vm1, %v2557_v2 }
  0x45   : > { %2304 = vmatpush3.msra.mxu1 %v2058_v42  ;;  %2305 = vmatprep.mubr.msk.f32.mxu1 %vm2558_vm1, %v2557_v2 }
  0x46   : > { %2295 = vmatmul.mubr.msk.f32.vlgmr.msra.gmra.mxu0 %vm325_vm0, %v2704_v9  ;;  %2306 = vmatmul.mubr.msk.f32.vlgmr.msra.gmra.mxu1 %vm325_vm0, %v2704_v9 }
  0x47   : > { %2308 = vmatprep.subr.mxu0 %v2557_v2  ;;  %2319 = vmatprep.subr.mxu1 %v2557_v2 }
  0x48   : > { %2309 = vmatpush3.msra.mxu0 %v2066_v43  ;;  %2320 = vmatpush3.msra.mxu1 %v2071_v44 }
  0x49   : > { %2310 = vmatprep.subr.mxu0 %v2557_v2  ;;  %2321 = vmatprep.subr.mxu1 %v2557_v2 }
  0x4a   : > { %2311 = vmatpush3.msra.mxu0 %v2065_v45  ;;  %2322 = vmatpush3.msra.mxu1 %v2070_v46 }
  0x4b   : > { %2312 = vmatprep.subr.mxu0 %v2557_v2  ;;  %2323 = vmatprep.subr.mxu1 %v2557_v2 }
  0x4c   : > { %2313 = vmatpush3.msra.mxu0 %v2064_v47  ;;  %2324 = vmatpush3.msra.mxu1 %v2069_v48 }
  0x4d   : > { %2314 = vmatprep.subr.mxu0 %v2557_v2  ;;  %2325 = vmatprep.subr.mxu1 %v2557_v2 }
  0x4e   : > { %2315 = vmatpush3.msra.mxu0 %v2063_v49  ;;  %2316 = vmatprep.mubr.msk.f32.mxu0 %vm2558_vm1, %v2557_v2 }
  0x4f   : > { %2326 = vmatpush3.msra.mxu1 %v2068_v50  ;;  %2327 = vmatprep.mubr.msk.f32.mxu1 %vm2558_vm1, %v2557_v2 }
  0x50   : > { %2317 = vmatmul.mubr.msk.f32.vlgmr.msra.gmra.mxu0 %vm325_vm0, %v2704_v9  ;;  %2328 = vmatmul.mubr.msk.f32.vlgmr.msra.gmra.mxu1 %vm325_vm0, %v2704_v9 }
  0x51   : > { %2330 = vmatprep.subr.mxu0 %v2557_v2  ;;  %2341 = vmatprep.subr.mxu1 %v2557_v2 }
  0x52   : > { %2331 = vmatpush3.msra.mxu0 %v2076_v51  ;;  %2342 = vmatpush3.msra.mxu1 %v2081_v52 }
  0x53   : > { %2332 = vmatprep.subr.mxu0 %v2557_v2  ;;  %2343 = vmatprep.subr.mxu1 %v2557_v2 }
  0x54   : > { %2333 = vmatpush3.msra.mxu0 %v2075_v53  ;;  %2344 = vmatpush3.msra.mxu1 %v2080_v54 }
  0x55   : > { %2334 = vmatprep.subr.mxu0 %v2557_v2  ;;  %2345 = vmatprep.subr.mxu1 %v2557_v2 }
  0x56   : > { %2335 = vmatpush3.msra.mxu0 %v2074_v55  ;;  %2346 = vmatpush3.msra.mxu1 %v2079_v56 }
  0x57   : > { %2336 = vmatprep.subr.mxu0 %v2557_v2  ;;  %2347 = vmatprep.subr.mxu1 %v2557_v2 }
  0x58   : > { %2337 = vmatpush3.msra.mxu0 %v2073_v57  ;;  %2338 = vmatprep.mubr.msk.f32.mxu0 %vm2558_vm1, %v2557_v2 }
  0x59   : > { %2348 = vmatpush3.msra.mxu1 %v2078_v58  ;;  %2349 = vmatprep.mubr.msk.f32.mxu1 %vm2558_vm1, %v2557_v2 }
  0x5a   : > { %2339 = vmatmul.mubr.msk.f32.vlgmr.msra.gmra.mxu0 %vm325_vm0, %v2704_v9  ;;  %2350 = vmatmul.mubr.msk.f32.vlgmr.msra.gmra.mxu1 %vm325_vm0, %v2704_v9 }
  0x5b   : > { %2352 = vmatprep.subr.mxu0 %v2557_v2  ;;  %2363 = vmatprep.subr.mxu1 %v2557_v2 }
  0x5c   : > { %2353 = vmatpush3.msra.mxu0 %v2086_v59  ;;  %2364 = vmatpush3.msra.mxu1 %v2091_v60 }
  0x5d   : > { %2354 = vmatprep.subr.mxu0 %v2557_v2  ;;  %2365 = vmatprep.subr.mxu1 %v2557_v2 }
  0x5e   : > { %2355 = vmatpush3.msra.mxu0 %v2085_v61  ;;  %2366 = vmatpush3.msra.mxu1 %v2090_v62 }
  0x5f   : > { %2356 = vmatprep.subr.mxu0 %v2557_v2  ;;  %2367 = vmatprep.subr.mxu1 %v2557_v2 }
  0x60   : > { %2357 = vmatpush3.msra.mxu0 %v2084_v63  ;;  %2368 = vmatpush3.msra.mxu1 %v2089_v0 }
  0x61   : > { %2358 = vmatprep.subr.mxu0 %v2557_v2  ;;  %2369 = vmatprep.subr.mxu1 %v2557_v2 }
  0x62   : > { %2359 = vmatpush3.msra.mxu0 %v2083_v1  ;;  %2360 = vmatprep.mubr.msk.f32.mxu0 %vm2558_vm1, %v2557_v2 }
  0x63   : > { %2370 = vmatpush3.msra.mxu1 %v2088_v3  ;;  %2371 = vmatprep.mubr.msk.f32.mxu1 %vm2558_vm1, %v2557_v2 }
  0x64   : > { %2361 = vmatmul.mubr.msk.f32.vlgmr.msra.gmra.mxu0 %vm325_vm0, %v2704_v9  ;;  %2372 = vmatmul.mubr.msk.f32.vlgmr.msra.gmra.mxu1 %vm325_vm0, %v2704_v9 }
  0xde   : > { %v395_v4 = vpop.f32.mrf.mxu0  ;;  %v471_v5 = vpop.f32.mrf.mxu1 }
  0xdf   : > { %400 = vst.msk [vmem:[#allocation2] sm:$0xff] %vm399_vm2, %v395_v4  ;;  %475 = vst.msk [vmem:[#allocation3] sm:$0xff] %vm399_vm2, %v471_v5 }
  0xe0   : > { %v2208_v6 = vpop.f32.mrf.mxu0  ;;  %v2219_v7 = vpop.f32.mrf.mxu1 }
  0xe8   : > { %v547_v8 = vpop.f32.mrf.mxu0  ;;  %v624_v11 = vpop.f32.mrf.mxu1 }
  0xe9   : > { %552 = vst.msk [vmem:[#allocation2 + $0x8] sm:$0xff] %vm399_vm2, %v547_v8  ;;  %629 = vst.msk [vmem:[#allocation3 + $0x8] sm:$0xff] %vm399_vm2, %v624_v11 }
  0xea   : > { %v2230_v2 = vpop.f32.mrf.mxu0  ;;  %v2241_v12 = vpop.f32.mrf.mxu1 }
  0xf2   : > { %v701_v13 = vpop.f32.mrf.mxu0  ;;  %v778_v14 = vpop.f32.mrf.mxu1 }
  0xf3   : > { %706 = vst.msk [vmem:[#allocation2 + $0x10] sm:$0xff] %vm399_vm2, %v701_v13  ;;  %783 = vst.msk [vmem:[#allocation3 + $0x10] sm:$0xff] %vm399_vm2, %v778_v14 }
  0xf4   : > { %v2252_v9 = vpop.f32.mrf.mxu0  ;;  %v2263_v15 = vpop.f32.mrf.mxu1 }
  0xfc   : > { %v855_v16 = vpop.f32.mrf.mxu0  ;;  %v932_v17 = vpop.f32.mrf.mxu1 }
  0xfd   : > { %860 = vst.msk [vmem:[#allocation2 + $0x18] sm:$0xff] %vm399_vm2, %v855_v16  ;;  %937 = vst.msk [vmem:[#allocation3 + $0x18] sm:$0xff] %vm399_vm2, %v932_v17 }
  0xfe   : > { %v2274_v18 = vpop.f32.mrf.mxu0  ;;  %v2285_v19 = vpop.f32.mrf.mxu1 }
 0x106   : > { %v1009_v20 = vpop.f32.mrf.mxu0  ;;  %v1086_v21 = vpop.f32.mrf.mxu1 }
 0x107   : > { %1014 = vst.msk [vmem:[#allocation2 + $0x20] sm:$0xff] %vm399_vm2, %v1009_v20  ;;  %1091 = vst.msk [vmem:[#allocation3 + $0x20] sm:$0xff] %vm399_vm2, %v1086_v21 }
 0x108   : > { %v2296_v22 = vpop.f32.mrf.mxu0  ;;  %v2307_v23 = vpop.f32.mrf.mxu1 }
 0x110   : > { %v1163_v24 = vpop.f32.mrf.mxu0  ;;  %v1240_v25 = vpop.f32.mrf.mxu1 }
 0x111   : > { %1168 = vst.msk [vmem:[#allocation2 + $0x28] sm:$0xff] %vm399_vm2, %v1163_v24  ;;  %1245 = vst.msk [vmem:[#allocation3 + $0x28] sm:$0xff] %vm399_vm2, %v1240_v25 }
 0x112   : > { %v2318_v26 = vpop.f32.mrf.mxu0  ;;  %v2329_v27 = vpop.f32.mrf.mxu1 }
 0x11a   : > { %v1317_v28 = vpop.f32.mrf.mxu0  ;;  %v1394_v29 = vpop.f32.mrf.mxu1 }
 0x11b   : > { %1322 = vst.msk [vmem:[#allocation2 + $0x30] sm:$0xff] %vm399_vm2, %v1317_v28  ;;  %1399 = vst.msk [vmem:[#allocation3 + $0x30] sm:$0xff] %vm399_vm2, %v1394_v29 }
 0x11c   : > { %v2340_v30 = vpop.f32.mrf.mxu0  ;;  %v2351_v31 = vpop.f32.mrf.mxu1 }
 0x124   : > { %v1471_v32 = vpop.f32.mrf.mxu0  ;;  %v1548_v33 = vpop.f32.mrf.mxu1 }
 0x125   : > { %1476 = vst.msk [vmem:[#allocation2 + $0x38] sm:$0xff] %vm399_vm2, %v1471_v32  ;;  %1553 = vst.msk [vmem:[#allocation3 + $0x38] sm:$0xff] %vm399_vm2, %v1548_v33 }
 0x126   : > { %v2362_v34 = vpop.f32.mrf.mxu0  ;;  %v2373_v35 = vpop.f32.mrf.mxu1 }
 0x127 LB: >> { %v2559_v36 = vmov 0.0   ;;  %vm2560_vm3 = vmmov 0   ;;  %s2093_s23 = sshll.u32 %s2555_s22, 5  ;;  %s2095_s30 = sshll.u32 %s2555_s22, 3  ;;  %vm1722_vm4 = vcmask 64512   ;;  %vm1816_vm5 = vcmask 1043456   ;;  %s2555_s22 = sphi %s3013_s22, %s1562_s22  }
 0x128   : >> { %2374 = vmatprep.subr.mxu0 %v2559_v36  ;;  %2382 = vmatprep.mubr.msk.f32.mxu0 %vm2560_vm3, %v2559_v36  ;;  %s1564_s12 = scalar_lea.vmem %s3096_s2, %s2093_s23  ;;  %s1643_s16 = scalar_lea.vmem [#allocation2], %s2095_s30  ;;  %v1809_v59 = vld [vmem:[#allocation4] sm:$0xff] }
 0x129   : >> { %2385 = vmatprep.subr.mxu1 %v2559_v36  ;;  %2387 = vmatprep.mubr.msk.f32.mxu1 %vm2560_vm3, %v2559_v36  ;;  %v1568_v37 = vld [vmem:[%s1564_s12 + $0x18] sm:$0xff]  ;;  %v1567_v38 = vld [vmem:[%s1564_s12 + $0x10] sm:$0xff]  ;;  %v1566_v40 = vld [vmem:[%s1564_s12 + $0x8] sm:$0xff]  ;;  %s1732_s17 = scalar_lea.vmem [#allocation3], %s2095_s30  ;;  %s2099_s18 = sshll.u32 %s2555_s22, 2 }
 0x12a   : >> { %2375 = vmatpush3.msra.mxu0 %v1568_v37  ;;  %v1565_v41 = vld [vmem:[%s1564_s12] sm:$0xff]  ;;  %s1811_s23 = scalar_lea.vmem %s3099_s5, %s2099_s18  ;;  %s1562_s22 = sadd.s32 1, %s2555_s22  }
 0x12b   : >> { %2376 = vmatprep.subr.mxu0 %v2559_v36  ;;  %v1812_v53 = vld [vmem:[%s1811_s23] sm:$0xf]  ;;  %p1559_p12 = scmp.ge.s32.totalorder %s1562_s22, 8  }
 0x12c   : >> { %v1644_v39 = vld [vmem:[%s1643_s16] sm:$0xff]  ;;  %2377 = vmatpush3.msra.mxu0 %v1567_v38  ;;  %s2104_s10 = sshll.u32 (%p1559_p12), %s2543_s27, 7  ;;  %s1917_s22 = sshll.u32 (%p1559_p12), %s304_s15, 4  ;;  %s1918_s22 = int_to_ptr.vmem [resolvable:$true] %s1917_s22 }
 0x12d   : >> { %2386 = vmatpush3.xpose.msk.msra.mxu1 %vm399_vm2, %v1644_v39  ;;  %2378 = vmatprep.subr.mxu0 %v2559_v36  ;;  %v1733_v42 = vld [vmem:[%s1732_s17] sm:$0xff]  ;;  %s3047_s17 = scalar_lea.hbm (%p1559_p12), %s3101_s7, %s2104_s10  ;;  %s3105_s18 = sand.u32 (%p1559_p12), 1, %s2535_s25  }
 0x12e   : >> { %2390 = vmatprep.subr.mxu1 %v2559_v36  ;;  %2379 = vmatpush3.msra.mxu0 %v1566_v40  ;;  %v2102_v0 = vld [vmem:[%s3100_s6] ss:$0 sm:$0xff] (%p1559_p12)  ;;  %s1903_s19 = scalar_lea.sflag (%p1559_p12), [#allocation6], %s3105_s18  ;;  %s2471_s21 = scalar_lea.vmem (%p1559_p12), %s1918_s22, 128 }
 0x12f   : >> { %2380 = vmatprep.subr.mxu0 %v2559_v36  ;;  %p2472_p13 = scmp.ne.s32.totalorder (%p1559_p12), %s1918_s22, %s2471_s21  ;;  %s2561_s27 = smov (%p1559_p12), [#allocation5]  }
 0x130   : >> { %2381 = vmatpush3.msra.mxu0 %v1565_v41  ;;  %s2475_s23 = sshll.u32 (%p1559_p12), %s2561_s27, 4  ;;  %s2476_s23 = int_to_ptr.vmem [resolvable:$false] %s2475_s23 }
 0x131   : >> { %2383 = vmatmul.mubr.msk.f32.vlgmr.msra.gmra.mxu0 %vm325_vm0, %v2706_v10  ;;  %2395 = vmatprep.subr.mxu0 %v2559_v36  ;;  %p2473_p0 = pnand (%p1559_p12), %p2472_p13, %p2642_p4  ;;  %s2477_s30 = scalar_lea.vmem (%p1559_p12), %s2476_s23, 256 }
 0x132   : >> { %2397 = vmatprep.mubr.msk.f32.mxu0 %vm2560_vm3, %v2559_v36  ;;  %2396 = vmatpush3.msk.msra.mxu0 %vm1816_vm5, %v1812_v53  ;;  %p2478_p2 = scmp.lt.s32.totalorder (%p1559_p12), %s1918_s22, %s2476_s23  ;;  %p2479_p3 = scmp.lt.s32.totalorder (%p1559_p12), %s2477_s30, %s2471_s21 }
 0x133   : > { %p2474_p1 = pneg (%p1559_p12), %p2473_p0 }
 0x134   : > { %p2480_p5 = por (%p1559_p12), %p2479_p3, %p2478_p2 }
 0x136   : > { %p2481_p6 = pnand (%p1559_p12), %p2480_p5, %p2474_p1 }
 0x1f1   : >> { %v1638_v43 = vpop.f32.mrf.mxu0 }
 0x1f2   : >> { %2388 = vmatmul.mubr.msk.f32.vlgmr.msra.gmra.mxu1 %vm399_vm2, %v1638_v43 }
 0x1f3   : >> { %v2384_v44 = vpop.f32.mrf.mxu0  ;;  %2391 = vmatpush3.msra.mxu1 %v1733_v42  ;;  %2392 = vmatprep.mubr.msk.f32.mxu1 %vm2560_vm3, %v2559_v36 }
 0x2b2   : >> { %v1718_v45 = vpop.f32.mrf.mxu1 }
 0x2b3   : >> { %v1723_v46 = vsel %vm1722_vm4, %v1718_v45, -inf }
 0x2b4   : >> { %1724 = vmax.xlane.f32.xlu0 %v1723_v46  ;;  %v2389_v47 = vpop.f32.mrf.mxu1 }
 0x33d   : >> { %v1725_v48 = vpop.xlane.xlu0 %1724 }
 0x33e   : >> { %v1726_v49 = vsub.f32 %v1718_v45, %v1725_v48 }
 0x340   : >> { %v1727_v50 = vmul.f32 1.442695, %v1726_v49 }
 0x342   : >> { %2467 = vpow2.f32 %v1727_v50 }
 0x34f   : >> { %v2468_v51 = vpop.eup %2467 }
 0x350   : >> { %2393 = vmatmul.mubr.msk.f32.vlgmr.msra.gmra.mxu1 %vm1722_vm4, %v2468_v51  ;;  %v1729_v52 = vsel %vm1722_vm4, %v2468_v51, 0.0 }
 0x351   : >> { %1730 = vadd.xlane.f32.xlu0 %v1729_v52 }
 0x3da   : >> { %v1731_v54 = vpop.xlane.xlu0 %1730 }
 0x3db   : >> { %2469 = vrcp.f32 %v1731_v54 }
 0x3e8   : >> { %v2470_v55 = vpop.eup %2469 }
 0x410   : >> { %v1803_v56 = vpop.f32.mrf.mxu1 }
 0x411   : >> { %v1808_v57 = vmul.f32 %v2470_v55, %v1803_v56 }
 0x412   : >> { %v2394_v58 = vpop.f32.mrf.mxu1 }
 0x413   : >> { %2398 = vmatmul.mubr.msk.f32.vlgmr.msra.gmra.mxu0 %vm399_vm2, %v1808_v57 }
 0x4d2   : > { %1561 = sbr.rel (!%p1559_p12) target bundleno = 295 (0x127), region = 129 }
 0x4d3   : >> { %v1886_v60 = vpop.f32.mrf.mxu0 }
 0x4d4   : >> { %v1890_v61 = vadd.f32 %v1886_v60, %v1809_v59 }
 0x4d5   : >> { %v2399_v62 = vpop.f32.mrf.mxu0 }
 0x4d6   : >> { %1891 = vst.msk [vmem:[#allocation4] sm:$0xff] %vm325_vm0, %v1890_v61 }
 0x4dd   : > { %v1892_v63 = vld [vmem:[#allocation4] sm:$0xff] }
 0x4de   : > { %v1900_v1 = vadd.f32 %v2102_v0, %v1892_v63 }
 0x4e0   : > { %1901 = vst.msk [vmem:[%s304_s15] sm:$0xff] %vm325_vm0, %v1900_v1 }
 0x4e1   : > { %2484 = shalt.err (!%p2481_p6)
}
 0x4e2   : > { %s2485_s20 = scalar_lea.hbm %s3047_s17, 128  ;;  %s2489_s10 = scalar_lea.hbm %s3101_s7, 256 }
 0x4e3   : > { %p2486_p7 = scmp.ne.s32.totalorder %s3047_s17, %s2485_s20  ;;  %p2490_p11 = scmp.lt.s32.totalorder %s3047_s17, %s3101_s7 }
 0x4e4   : > { %p2491_p12 = scmp.lt.s32.totalorder %s2489_s10, %s2485_s20 }
 0x4e5   : > { %p2487_p9 = pnand %p2486_p7, %p2642_p4 }
 0x4e6   : > { %p2492_p13 = por %p2491_p12, %p2490_p11 }
 0x4e7   : > { %p2488_p10 = pneg %p2487_p9 }
 0x4e9   : > { %p2493_p0 = pnand %p2492_p13, %p2488_p10 }
 0x4eb   : > { %2496 = shalt.err (!%p2493_p0)
}
 0x4ec   : > { %2400 = dma.vmem_to_hbm [thread:$0]  (%p2642_p4), %s1918_s22, 128, %s3047_s17, %s1903_s19  }
 0x4ed PF: > { %p2406_p1 = scmp.ge.s32.totalorder %s2551_s29, 2  ;;  %s1929_s18 = sand.u32 1, %s2531_s24  }
 0x4ee   : > { %s1930_s21 = scalar_lea.sflag [#allocation6], %s1929_s18 }
 0x4ef   : > { %p2403_p2 = pnand %p2406_p1, %p2649_p8 }
 0x4f1   : > { %p2404_p3 = pneg %p2403_p2 }
 0x4f3   : > { %2526 = dma.done.wait (%p2404_p3), %s1930_s21, 128  }
 0x4f4   : > { %2528 = vsyncadd (%p2404_p3), %s1930_s21, 4294967168  ;;  %s20_s29 = sadd.s32 1, %s2551_s29   ;;  %s3106_s24 = smov %s2535_s25 }
 0x4f5   : > { %p17_p5 = scmp.ge.s32.totalorder %s20_s29, 4   ;;  %s3107_s25 = smov %s2539_s26 }
 0x4f6   : > { %s3108_s26 = smov %s2655_s14  ;;  %s3109_s27 = smov %s2547_s28 }
 0x4f7   : > { %s3110_s28 = smov %s3112_s9  ;;  %19 = sbr.rel (!%p17_p5) target bundleno = 4 (0x4), region = 140 }
 0x4fc   :  { %1935 = vsyncpa [#allocation6], 1 }
 0x4fd   :  { %1937 = vsyncpa [#allocation6 + $0x1], 1 }

</bundles_post_ra>
